<compile_context>
chip_gen: v6e
topology: v6e:2x2x1
jax: 0.10.0
libtpu: 0.0.40
codegen_flags: <defaults>
</compile_context>

<pallas_src>
import jax
import jax.numpy as jnp
from jax.experimental import pallas as pl
from jax.experimental.pallas import tpu as pltpu

LANE = 128          # TPU vreg lane width
TILE_B_GRAN = 16    # batch-tile granularity (covers the bf16 sublane tile of 16)
MAX_TILE_B = 2048   # big tiles amortize the ~0.35us per-grid-step overhead


def _round_up(n, m):
    return ((n + m - 1) // m) * m


def _fc_kernel(x_ref, w1_ref, b1_ref, w2_ref, b2_ref, w3_ref, b3_ref, o_ref):
    # x tile arrives f32 (tile_b, in_dim); cast to bf16 in-kernel (hidden under DMA).
    x = x_ref[...].astype(jnp.bfloat16)

    # Layer 1: Linear -> ReLU.  bf16 x bf16 on the MXU, f32 accumulate; bias/ReLU in f32.
    h1 = jnp.dot(x, w1_ref[...], preferred_element_type=jnp.float32) + b1_ref[...]
    h1 = jnp.maximum(h1, 0.0)

    # Layer 2: Linear -> ReLU (cast activations to bf16 for the MXU, accumulate f32).
    h2 = jnp.dot(h1.astype(jnp.bfloat16), w2_ref[...],
                 preferred_element_type=jnp.float32) + b2_ref[...]
    h2 = jnp.maximum(h2, 0.0)

    # Top layer: plain Linear (head=False, output_activation=None).  Narrow out_dim store.
    out = jnp.dot(h2.astype(jnp.bfloat16), w3_ref[...],
                  preferred_element_type=jnp.float32) + b3_ref[...]
    o_ref[...] = out.astype(o_ref.dtype)


def _batch_dim_semantics():
    # v7x has 2 TensorCores per chip: only CORE_PARALLEL actually splits the grid axis
    # across them.  On v5e/v6e (single TC) plain "parallel" is a harmless no-op.
    kind = jax.devices()[0].device_kind.lower()
    if "v7" in kind:
        return (getattr(pltpu, "CORE_PARALLEL", "parallel"),)
    return ("parallel",)


def _choose_tile_b(batch, max_tile_b):
    # Adaptive tile: cap padding waste to <1 granule and give v7x's 2 TCs >=2 grid steps
    # when the batch is large enough to be worth splitting.
    n_tiles = pl.cdiv(batch, max_tile_b)
    if batch >= 512:
        n_tiles = max(n_tiles, 2)
    tile_b = _round_up(pl.cdiv(batch, n_tiles), TILE_B_GRAN)
    return tile_b


def fully_connected_forward(x, params, *, max_tile_b=MAX_TILE_B):
    """Fused MLP forward: x @ W1 + b1 -> ReLU -> x @ W2 + b2 -> ReLU -> x @ W3 + b3."""
    (w1, b1), (w2, b2), (w3, b3) = params
    x = x.astype(jnp.float32)                       # mirrors the module's x.float()
    batch, in_dim = x.shape
    h1_dim, h2_dim, out_dim = w1.shape[1], w2.shape[1], w3.shape[1]

    # Lane-pad the *hidden* widths with zeros (zero weight cols + zero bias cols =>
    # padded activations are exactly 0 through ReLU, no leakage).  The output stays
    # narrow (out_dim wide) so the HBM writeback is not amplified.
    h1_p = _round_up(h1_dim, LANE)
    h2_p = _round_up(h2_dim, LANE)

    w1p = jnp.zeros((in_dim, h1_p), jnp.bfloat16).at[:, :h1_dim].set(w1.astype(jnp.bfloat16))
    b1p = jnp.zeros((1, h1_p), jnp.float32).at[:, :h1_dim].set(b1.astype(jnp.float32))
    w2p = jnp.zeros((h1_p, h2_p), jnp.bfloat16).at[:h1_dim, :h2_dim].set(w2.astype(jnp.bfloat16))
    b2p = jnp.zeros((1, h2_p), jnp.float32).at[:, :h2_dim].set(b2.astype(jnp.float32))
    w3p = jnp.zeros((h2_p, out_dim), jnp.bfloat16).at[:h2_dim, :].set(w3.astype(jnp.bfloat16))
    b3p = b3.astype(jnp.float32).reshape(1, out_dim)

    # Batch tiling (rows only; x keeps its f32 dtype and narrow feature width).
    tile_b = _choose_tile_b(batch, max_tile_b)
    padded_batch = _round_up(batch, tile_b)
    if padded_batch != batch:
        xp = jnp.zeros((padded_batch, in_dim), jnp.float32).at[:batch].set(x)
    else:
        xp = x

    grid = (padded_batch // tile_b,)

    def const_spec(shape):
        return pl.BlockSpec(shape, lambda i: (0, 0))   # DMA'd once, VMEM-resident

    flops = 2 * padded_batch * (in_dim * h1_p + h1_p * h2_p + h2_p * out_dim)
    bytes_accessed = int(
        xp.size * 4
        + (w1p.size + w2p.size + w3p.size) * 2
        + (b1p.size + b2p.size + b3p.size) * 4
        + padded_batch * out_dim * 4
    )

    out_padded = pl.pallas_call(
        _fc_kernel,
        out_shape=jax.ShapeDtypeStruct((padded_batch, out_dim), jnp.float32),
        grid=grid,
        in_specs=[
            pl.BlockSpec((tile_b, in_dim), lambda i: (i, 0)),   # x: tiled over batch rows
            const_spec(w1p.shape), const_spec(b1p.shape),
            const_spec(w2p.shape), const_spec(b2p.shape),
            const_spec(w3p.shape), const_spec(b3p.shape),
        ],
        out_specs=pl.BlockSpec((tile_b, out_dim), lambda i: (i, 0)),
        compiler_params=pltpu.CompilerParams(
            dimension_semantics=_batch_dim_semantics(),
        ),
        cost_estimate=pl.CostEstimate(
            flops=flops, transcendentals=0, bytes_accessed=bytes_accessed),
    )(xp, w1p, b1p, w2p, b2p, w3p, b3p)

    # Strip the (at most one granule of) batch padding; output width is already exact.
    return out_padded[:batch] if padded_batch != batch else out_padded


def init_params(key, input_dim, hidden_dims, output_dim):
    """Deterministic parameter init (uniform, mimicking nn.Linear's fan-in scaling)."""
    dims = [input_dim] + list(hidden_dims) + [output_dim]
    params = []
    for in_d, out_d in zip(dims[:-1], dims[1:]):
        key, kw, kb = jax.random.split(key, 3)
        bound = 1.0 / (in_d ** 0.5)
        w = jax.random.uniform(kw, (in_d, out_d), jnp.float32, -bound, bound)
        b = jax.random.uniform(kb, (1, out_d), jnp.float32, -bound, bound)
        params.append((w, b))
    return params


def reference_forward(x, params):
    """Pure-JAX reference applying the same bf16 rounding of dot operands as the kernel."""
    (w1, b1), (w2, b2), (w3, b3) = params
    hi = jax.lax.Precision.HIGHEST

    def r(a):
        return a.astype(jnp.bfloat16).astype(jnp.float32)

    h = jnp.maximum(jnp.dot(r(x), r(w1), precision=hi) + b1, 0.0)
    h = jnp.maximum(jnp.dot(r(h), r(w2), precision=hi) + b2, 0.0)
    return jnp.dot(r(h), r(w3), precision=hi) + b3


if __name__ == "__main__":
    input_dim, hidden_dims, output_dim = 16, [32, 64], 8

    key = jax.random.PRNGKey(0)
    key, kx = jax.random.split(key)
    params = init_params(key, input_dim, hidden_dims, output_dim)

    # Case 1: small batch (single grid step).
    batch = 8
    x = jax.random.normal(kx, (batch, input_dim), jnp.float32)
    out = jax.block_until_ready(fully_connected_forward(x, params))
    ref = reference_forward(x, params)
    assert out.shape == (batch, output_dim)
    assert jnp.allclose(out, ref, atol=2e-3, rtol=2e-3), float(jnp.max(jnp.abs(out - ref)))

    # Case 2: non-multiple batch with a small tile to exercise the multi-step grid path.
    batch2 = 20
    key, kx2 = jax.random.split(key)
    x2 = jax.random.normal(kx2, (batch2, input_dim), jnp.float32)
    out2 = jax.block_until_ready(fully_connected_forward(x2, params, max_tile_b=16))
    ref2 = reference_forward(x2, params)
    assert out2.shape == (batch2, output_dim)
    assert jnp.allclose(out2, ref2, atol=2e-3, rtol=2e-3), float(jnp.max(jnp.abs(out2 - ref2)))

    print("KERNEL_OK")
</pallas_src>

<mosaic_0001>
module attributes {stable_mosaic.version = 11 : i64} {
  func.func @_fc_kernel(%arg0: i32, %arg1: memref<16x16xf32, #tpu.memory_space<vmem>>, %arg2: memref<16x128xbf16, #tpu.memory_space<vmem>>, %arg3: memref<1x128xf32, #tpu.memory_space<vmem>>, %arg4: memref<128x128xbf16, #tpu.memory_space<vmem>>, %arg5: memref<1x128xf32, #tpu.memory_space<vmem>>, %arg6: memref<128x8xbf16, #tpu.memory_space<vmem>>, %arg7: memref<1x8xf32, #tpu.memory_space<vmem>>, %arg8: memref<16x8xf32, #tpu.memory_space<vmem>>) attributes {dimension_semantics = [#tpu.dimension_semantics<parallel>], iteration_bounds = array<i64: 1>, scalar_prefetch = 0 : i64, scratch_operands = 0 : i64, tpu.core_type = #tpu.core_type<tc>, window_params = [{transform_indices = @transform_0, window_bounds = array<i64: 16, 16>}, {pipeline_mode = #tpu.pipeline_mode<synchronous>, transform_indices = @transform_1, window_bounds = array<i64: 16, 128>}, {pipeline_mode = #tpu.pipeline_mode<synchronous>, transform_indices = @transform_2, window_bounds = array<i64: 1, 128>}, {pipeline_mode = #tpu.pipeline_mode<synchronous>, transform_indices = @transform_3, window_bounds = array<i64: 128, 128>}, {pipeline_mode = #tpu.pipeline_mode<synchronous>, transform_indices = @transform_4, window_bounds = array<i64: 1, 128>}, {pipeline_mode = #tpu.pipeline_mode<synchronous>, transform_indices = @transform_5, window_bounds = array<i64: 128, 8>}, {pipeline_mode = #tpu.pipeline_mode<synchronous>, transform_indices = @transform_6, window_bounds = array<i64: 1, 8>}, {transform_indices = @transform_7, window_bounds = array<i64: 16, 8>}]} {
    %c0 = arith.constant 0 : index
    %c0_0 = arith.constant 0 : index
    %0 = vector.load %arg1[%c0, %c0_0] : memref<16x16xf32, #tpu.memory_space<vmem>>, vector<16x16xf32>
    %1 = arith.truncf %0 : vector<16x16xf32> to vector<16x16xbf16>
    %c0_1 = arith.constant 0 : index
    %c0_2 = arith.constant 0 : index
    %2 = vector.load %arg2[%c0_1, %c0_2] : memref<16x128xbf16, #tpu.memory_space<vmem>>, vector<16x128xbf16>
    %cst = arith.constant dense<0.000000e+00> : vector<16x128xf32>
    %3 = tpu.matmul %1, %2, %cst {dimension_numbers = #tpu.dot_dimension_numbers<[1], [0], [0], [1], [0, 0, 1, 1], [], []>} : vector<16x16xbf16>, vector<16x128xbf16>, vector<16x128xf32> -> vector<16x128xf32>
    %c0_3 = arith.constant 0 : index
    %c0_4 = arith.constant 0 : index
    %4 = vector.load %arg3[%c0_3, %c0_4] : memref<1x128xf32, #tpu.memory_space<vmem>>, vector<1x128xf32>
    %5 = vector.broadcast %4 : vector<1x128xf32> to vector<16x128xf32>
    %6 = arith.addf %3, %5 : vector<16x128xf32>
    %cst_5 = arith.constant 0.000000e+00 : f32
    %7 = vector.broadcast %cst_5 : f32 to vector<16x128xf32>
    %8 = arith.maximumf %6, %7 : vector<16x128xf32>
    %9 = arith.truncf %8 : vector<16x128xf32> to vector<16x128xbf16>
    %c0_6 = arith.constant 0 : index
    %c0_7 = arith.constant 0 : index
    %10 = vector.load %arg4[%c0_6, %c0_7] : memref<128x128xbf16, #tpu.memory_space<vmem>>, vector<128x128xbf16>
    %cst_8 = arith.constant dense<0.000000e+00> : vector<16x128xf32>
    %11 = tpu.matmul %9, %10, %cst_8 {dimension_numbers = #tpu.dot_dimension_numbers<[1], [0], [0], [1], [0, 0, 1, 1], [], []>} : vector<16x128xbf16>, vector<128x128xbf16>, vector<16x128xf32> -> vector<16x128xf32>
    %c0_9 = arith.constant 0 : index
    %c0_10 = arith.constant 0 : index
    %12 = vector.load %arg5[%c0_9, %c0_10] : memref<1x128xf32, #tpu.memory_space<vmem>>, vector<1x128xf32>
    %13 = vector.broadcast %12 : vector<1x128xf32> to vector<16x128xf32>
    %14 = arith.addf %11, %13 : vector<16x128xf32>
    %cst_11 = arith.constant 0.000000e+00 : f32
    %15 = vector.broadcast %cst_11 : f32 to vector<16x128xf32>
    %16 = arith.maximumf %14, %15 : vector<16x128xf32>
    %17 = arith.truncf %16 : vector<16x128xf32> to vector<16x128xbf16>
    %c0_12 = arith.constant 0 : index
    %c0_13 = arith.constant 0 : index
    %18 = vector.load %arg6[%c0_12, %c0_13] : memref<128x8xbf16, #tpu.memory_space<vmem>>, vector<128x8xbf16>
    %cst_14 = arith.constant dense<0.000000e+00> : vector<16x8xf32>
    %19 = tpu.matmul %17, %18, %cst_14 {dimension_numbers = #tpu.dot_dimension_numbers<[1], [0], [0], [1], [0, 0, 1, 1], [], []>} : vector<16x128xbf16>, vector<128x8xbf16>, vector<16x8xf32> -> vector<16x8xf32>
    %c0_15 = arith.constant 0 : index
    %c0_16 = arith.constant 0 : index
    %20 = vector.load %arg7[%c0_15, %c0_16] : memref<1x8xf32, #tpu.memory_space<vmem>>, vector<1x8xf32>
    %21 = vector.broadcast %20 : vector<1x8xf32> to vector<16x8xf32>
    %22 = arith.addf %19, %21 : vector<16x8xf32>
    %c0_17 = arith.constant 0 : index
    %c0_18 = arith.constant 0 : index
    %23 = vector.load %arg8[%c0_17, %c0_18] : memref<16x8xf32, #tpu.memory_space<vmem>>, vector<16x8xf32>
    tpu.vector_store %arg8[%c0_17, %c0_18], %22 {strides = array<i32>} : memref<16x8xf32, #tpu.memory_space<vmem>>, vector<16x8xf32>,
    return
  }
  func.func @transform_0(%arg0: i32) -> (i32, i32) {
    %c0_i32 = arith.constant 0 : i32
    %c0_i32_0 = arith.constant 0 : i32
    return %arg0, %c0_i32 : i32, i32
  }
  func.func @transform_1(%arg0: i32) -> (i32, i32) {
    %c0_i32 = arith.constant 0 : i32
    %c0_i32_0 = arith.constant 0 : i32
    %c0_i32_1 = arith.constant 0 : i32
    return %c0_i32, %c0_i32_0 : i32, i32
  }
  func.func @transform_2(%arg0: i32) -> (i32, i32) {
    %c0_i32 = arith.constant 0 : i32
    %c0_i32_0 = arith.constant 0 : i32
    %c0_i32_1 = arith.constant 0 : i32
    return %c0_i32, %c0_i32_0 : i32, i32
  }
  func.func @transform_3(%arg0: i32) -> (i32, i32) {
    %c0_i32 = arith.constant 0 : i32
    %c0_i32_0 = arith.constant 0 : i32
    %c0_i32_1 = arith.constant 0 : i32
    return %c0_i32, %c0_i32_0 : i32, i32
  }
  func.func @transform_4(%arg0: i32) -> (i32, i32) {
    %c0_i32 = arith.constant 0 : i32
    %c0_i32_0 = arith.constant 0 : i32
    %c0_i32_1 = arith.constant 0 : i32
    return %c0_i32, %c0_i32_0 : i32, i32
  }
  func.func @transform_5(%arg0: i32) -> (i32, i32) {
    %c0_i32 = arith.constant 0 : i32
    %c0_i32_0 = arith.constant 0 : i32
    %c0_i32_1 = arith.constant 0 : i32
    return %c0_i32, %c0_i32_0 : i32, i32
  }
  func.func @transform_6(%arg0: i32) -> (i32, i32) {
    %c0_i32 = arith.constant 0 : i32
    %c0_i32_0 = arith.constant 0 : i32
    %c0_i32_1 = arith.constant 0 : i32
    return %c0_i32, %c0_i32_0 : i32, i32
  }
  func.func @transform_7(%arg0: i32) -> (i32, i32) {
    %c0_i32 = arith.constant 0 : i32
    %c0_i32_0 = arith.constant 0 : i32
    return %arg0, %c0_i32 : i32, i32
  }
}

</mosaic_0001>

<bundles_post_ra>
// kernel: tpu_custom_call.1
= control target key start
LH: loop header
LB: loop body
LE: loop exit
PB: predicated region body
PF: predicated region fallthrough
CT: control target
= control target key end

     0   :  { %12 = vsyncpa [#allocation3], 0  ;;  %s647_s0 = inlined_call_operand.hbm [shape: f32[16,16], index: 0, kind: input, shape index: {}]   ;;  %s648_s1 = inlined_call_operand.vmem [shape: bf16[16,128], index: 1, kind: input, shape index: {}]   ;;  %s649_s2 = inlined_call_operand.vmem [shape: f32[1,128], index: 2, kind: input, shape index: {}]   ;;  %s650_s3 = inlined_call_operand.vmem [shape: bf16[128,128], index: 3, kind: input, shape index: {}]   ;;  %s651_s4 = inlined_call_operand.hbm [shape: f32[1,128], index: 4, kind: input, shape index: {}]   ;;  %s652_s5 = inlined_call_operand.vmem [shape: bf16[128,8], index: 5, kind: input, shape index: {}]   ;;  %s653_s6 = inlined_call_operand.vmem [shape: f32[1,8], index: 6, kind: input, shape index: {}]   ;;  %s654_s7 = inlined_call_operand.vmem [shape: f32[16,8], index: 7, kind: output, shape index: {}]  }
   0x1   :  { %13 = vsyncpa [#allocation5], 0  ;;  %s509_s24 = smov [#allocation2]  }
   0x2   :  { %s19_s25 = sshll.u32 %s509_s24, 4  ;;  %s20_s25 = int_to_ptr.vmem [resolvable:$true] %s19_s25 }
   0x3   :  { %s473_s26 = scalar_lea.vmem %s20_s25, 256  ;;  %p478_p1 = scmp.lt.s32.totalorder %s20_s25, %s20_s25 }
   0x4   :  { %p474_p0 = scmp.ne.s32.totalorder %s20_s25, %s473_s26  ;;  %p479_p2 = scmp.lt.s32.totalorder %s473_s26, %s473_s26 }
   0x6   :  { %p480_p3 = por %p479_p2, %p478_p1 }
   0x8   :  { %p481_p4 = pnand %p480_p3, %p474_p0 }
   0xa   :  { %484 = shalt.err (!%p481_p4)
}
   0xb   :  { %s510_s27 = smov 128   ;;  %s511_s28 = smov 8  }
   0xc   :  { %25 = dma.hbm_to_vmem [thread:$0]  %s647_s0, 256, %s20_s25, [#allocation3], %s510_s27, %s510_s27, %s511_s28  }
   0xd   :  { %s512_s8 = smov [#allocation4]  }
   0xe   :  { %s38_s9 = sshll.u32 %s512_s8, 4  ;;  %s39_s9 = int_to_ptr.vmem [resolvable:$true] %s38_s9 }
   0xf   :  { %s493_s10 = scalar_lea.vmem %s39_s9, 16  ;;  %s497_s11 = scalar_lea.vmem %s39_s9, 32 }
  0x10   :  { %p494_p5 = scmp.ne.s32.totalorder %s39_s9, %s493_s10  ;;  %p498_p6 = scmp.lt.s32.totalorder %s39_s9, %s39_s9 }
  0x11   :  { %p499_p7 = scmp.lt.s32.totalorder %s497_s11, %s493_s10 }
  0x13   :  { %p500_p8 = por %p499_p7, %p498_p6 }
  0x15   :  { %p501_p9 = pnand %p500_p8, %p494_p5 }
  0x17   :  { %504 = shalt.err (!%p501_p9)
}
  0x18   :  { %41 = dma.hbm_to_vmem [thread:$0]  %s651_s4, 16, %s39_s9, [#allocation5]  }
  0x19   :  { %505 = dma.done.wait [#allocation3], 256  }
  0x1a   :  { %506 = vsyncadd [#allocation3], 4294967040 }
  0x1b   :  { %507 = dma.done.wait [#allocation5], 16  }
  0x1c   :  { %508 = vsyncadd [#allocation5], 4294967280  ;;  %v513_v0 = vmov 0.0   ;;  %vm514_vm0 = vmmov 0   ;;  %v448_v1 = vld [vmem:[%s648_s1] sm:$0xff]   ;;  %v54_v3 = vld [vmem:[#allocation2 + $0x8] sm:$0xff] }
  0x1d   :  { %396 = vmatprep.subr.bf16.mxu0 %v513_v0  ;;  %398 = vmatprep.mubr.msk.bf16.mxu0 %vm514_vm0, %v513_v0  ;;  %v53_v2 = vld [vmem:[#allocation2] sm:$0xff]  ;;  %vm71_vm1 = vcmask 130048   ;;  %v449_v5 = vld [vmem:[%s650_s3 + $0x38] sm:$0xff]   ;;  %v450_v6 = vld [vmem:[%s650_s3 + $0x30] sm:$0xff]   ;;  %vm346_vm2 = vcmask 64512  }
  0x1e   :  { %402 = vmatprep.subr.bf16.mxu1 %v513_v0  ;;  %418 = vmatprep.mubr.msk.bf16.mxu1 %vm514_vm0, %v513_v0  ;;  %v55_v4 = vpack.c.bf16 %v54_v3, %v53_v2  ;;  %v451_v7 = vld [vmem:[%s650_s3 + $0x28] sm:$0xff]   ;;  %v452_v8 = vld [vmem:[%s650_s3 + $0x20] sm:$0xff]   ;;  %v453_v9 = vld [vmem:[%s650_s3 + $0x18] sm:$0xff]  }
  0x1f   :  { %397 = vmatpush3.bf16.msra.mxu0 %v448_v1  ;;  %403 = vmatpush3.bf16.msra.mxu1 %v449_v5  ;;  %v454_v10 = vld [vmem:[%s650_s3 + $0x10] sm:$0xff]   ;;  %v455_v11 = vld [vmem:[%s650_s3 + $0x8] sm:$0xff]   ;;  %v456_v12 = vld [vmem:[%s650_s3] sm:$0xff]  }
  0x20   :  { %422 = vmatprep.subr.bf16.mxu0 %v513_v0  ;;  %404 = vmatprep.subr.bf16.mxu1 %v513_v0  ;;  %v457_v13 = vld [vmem:[%s652_s5 + $0x38] sm:$0xff]   ;;  %v458_v14 = vld [vmem:[%s652_s5 + $0x30] sm:$0xff]   ;;  %v459_v15 = vld [vmem:[%s652_s5 + $0x28] sm:$0xff]  }
  0x21   :  { %v460_v16 = vld [vmem:[%s652_s5 + $0x20] sm:$0xff]   ;;  %v461_v17 = vld [vmem:[%s652_s5 + $0x18] sm:$0xff]   ;;  %v462_v28 = vld [vmem:[%s652_s5 + $0x10] sm:$0xff]  }
  0x22   :  { %399 = vmatmul.mubr.msk.bf16.vlgmr.msra.gmra.mxu0 %vm71_vm1, %v55_v4  ;;  %v355_v18 = vld [vmem:[%s649_s2] ss:$0 sm:$0xff]  ;;  %v463_v29 = vld [vmem:[%s652_s5 + $0x8] sm:$0xff]   ;;  %v358_v31 = vld [vmem:[#allocation4] ss:$0 sm:$0xff] }
  0x23   :  { %438 = vmatprep.mubr.msk.bf16.mxu0 %vm514_vm0, %v513_v0  ;;  %405 = vmatpush3.bf16.msra.mxu1 %v450_v6  ;;  %v464_v30 = vld [vmem:[%s652_s5] sm:$0xff]  }
  0x24   :  { %406 = vmatprep.subr.bf16.mxu1 %v513_v0  ;;  %423 = vmatpush3.bf16.msra.mxu0 %v457_v13  ;;  %v367_v41 = vld [vmem:[%s653_s6] ss:$0 sm:$0xff] }
  0x25   :  { %424 = vmatprep.subr.bf16.mxu0 %v513_v0 }
  0x27   :  { %407 = vmatpush3.bf16.msra.mxu1 %v451_v7 }
  0x28   :  { %408 = vmatprep.subr.bf16.mxu1 %v513_v0  ;;  %425 = vmatpush3.bf16.msra.mxu0 %v458_v14 }
  0x29   :  { %426 = vmatprep.subr.bf16.mxu0 %v513_v0 }
  0x2b   :  { %409 = vmatpush3.bf16.msra.mxu1 %v452_v8 }
  0x2c   :  { %410 = vmatprep.subr.bf16.mxu1 %v513_v0  ;;  %427 = vmatpush3.bf16.msra.mxu0 %v459_v15 }
  0x2d   :  { %428 = vmatprep.subr.bf16.mxu0 %v513_v0 }
  0x2f   :  { %411 = vmatpush3.bf16.msra.mxu1 %v453_v9 }
  0x30   :  { %412 = vmatprep.subr.bf16.mxu1 %v513_v0  ;;  %429 = vmatpush3.bf16.msra.mxu0 %v460_v16 }
  0x31   :  { %430 = vmatprep.subr.bf16.mxu0 %v513_v0 }
  0x33   :  { %413 = vmatpush3.bf16.msra.mxu1 %v454_v10 }
  0x34   :  { %414 = vmatprep.subr.bf16.mxu1 %v513_v0  ;;  %431 = vmatpush3.bf16.msra.mxu0 %v461_v17 }
  0x35   :  { %432 = vmatprep.subr.bf16.mxu0 %v513_v0 }
  0x37   :  { %415 = vmatpush3.bf16.msra.mxu1 %v455_v11 }
  0x38   :  { %416 = vmatprep.subr.bf16.mxu1 %v513_v0  ;;  %433 = vmatpush3.bf16.msra.mxu0 %v462_v28 }
  0x39   :  { %434 = vmatprep.subr.bf16.mxu0 %v513_v0 }
  0x3b   :  { %417 = vmatpush3.bf16.msra.mxu1 %v456_v12 }
  0x3c   :  { %435 = vmatpush3.bf16.msra.mxu0 %v463_v29 }
  0x3d   :  { %436 = vmatprep.subr.bf16.mxu0 %v513_v0 }
  0x40   :  { %437 = vmatpush3.bf16.msra.mxu0 %v464_v30 }
  0xe2   :  { %v109_v19 = vpop.f32.mrf.mxu0 }
  0xe3   :  { %v110_v21 = vadd.f32 %v355_v18, %v109_v19 }
  0xe4   :  { %v400_v20 = vpop.f32.mrf.mxu0 }
  0xe5   :  { %v116_v25 = vmax.f32 %v110_v21, 0.0 }
  0xe6   :  { %v112_v22 = vpop.f32.mrf.mxu0 }
  0xe7   :  { %v113_v23 = vadd.f32 %v355_v18, %v112_v22 }
  0xe8   :  { %v401_v24 = vpop.f32.mrf.mxu0 }
  0xe9   :  { %v117_v26 = vmax.f32 %v113_v23, 0.0 }
  0xeb   :  { %v118_v27 = vpack.c.bf16 %v117_v26, %v116_v25 }
  0xed   :  { %419 = vmatmul.mubr.bf16.vlgmr.msra.gmra.mxu1 %v118_v27 }
 0x1ad   :  { %v224_v32 = vpop.f32.mrf.mxu1 }
 0x1ae   :  { %v225_v34 = vadd.f32 %v358_v31, %v224_v32 }
 0x1af   :  { %v420_v33 = vpop.f32.mrf.mxu1 }
 0x1b0   :  { %v231_v38 = vmax.f32 %v225_v34, 0.0 }
 0x1b1   :  { %v227_v35 = vpop.f32.mrf.mxu1 }
 0x1b2   :  { %v228_v36 = vadd.f32 %v358_v31, %v227_v35 }
 0x1b3   :  { %v421_v37 = vpop.f32.mrf.mxu1 }
 0x1b4   :  { %v232_v39 = vmax.f32 %v228_v36, 0.0 }
 0x1b6   :  { %v233_v40 = vpack.c.bf16 %v232_v39, %v231_v38 }
 0x1b8   :  { %439 = vmatmul.mubr.bf16.vlgmr.msra.gmra.mxu0 %v233_v40 }
 0x278   :  { %v339_v42 = vpop.f32.mrf.mxu0 }
 0x279   :  { %v340_v43 = vadd.f32 %v367_v41, %v339_v42 }
 0x27a   :  { %v440_v44 = vpop.f32.mrf.mxu0 }
 0x27b   :  { %347 = vst.msk [vmem:[%s654_s7] sm:$0xff] %vm346_vm2, %v340_v43 }
 0x27c   :  { %v342_v45 = vpop.f32.mrf.mxu0 }
 0x27d   :  { %v343_v46 = vadd.f32 %v367_v41, %v342_v45 }
 0x27e   :  { %v441_v47 = vpop.f32.mrf.mxu0 }
 0x27f   :  { %348 = vst.msk [vmem:[%s654_s7 + $0x8] sm:$0xff] %vm346_vm2, %v343_v46 }
 0x280   :  { %353 = vsyncpa [#allocation3], 1 }
 0x281   :  { %354 = vsyncpa [#allocation5], 1 }

</bundles_post_ra>
